<compile_context>
chip_gen: v6e
topology: v6e:2x2x1
jax: 0.10.0
libtpu: 0.0.40
codegen_flags: <defaults>
</compile_context>

<pallas_src>
import jax
import jax.numpy as jnp
from jax.experimental import pallas as pl
from jax.experimental.pallas import tpu as pltpu


def _mlp_kernel(x_ref, w1_ref, b1_ref, w2_ref, b2_ref, o_ref):
    # x arrives f32 (single HBM read); cast to bf16 in-VMEM for the MXU.
    x = x_ref[...].astype(jnp.bfloat16)
    h = jnp.dot(x, w1_ref[...], preferred_element_type=jnp.float32)
    h = jnp.maximum(h + b1_ref[...], 0.0)                  # f32 epilogue (bias+ReLU)
    out = jnp.dot(h.astype(jnp.bfloat16), w2_ref[...],
                  preferred_element_type=jnp.float32)
    o_ref[...] = (out + b2_ref[...]).astype(o_ref.dtype)   # f32 out


def _default_b_tile():
    """Per-generation batch tile: big enough to amortize ~0.35us/step pipeline
    overhead, small enough for the default scoped-VMEM limit (no flag bumps)."""
    try:
        kind = jax.devices()[0].device_kind.lower()
    except Exception:
        kind = ""
    if "v5" in kind:
        return 8192          # 16 MiB default scoped VMEM on v5e
    if "v6" in kind or "v7" in kind or "7x" in kind:
        return 16384         # fits 32 MiB default scoped VMEM on v6e/v7x
    return 8192              # unknown / interpret: conservative


def wrapped_model_forward(x, params, label=None, *, b_tile=None):
    """Equivalent of WrappedModel(inner_model)(x, label): `label` is ignored and
    the inner model's forward is evaluated inside Pallas."""
    del label  # WrappedModel.forward ignores `label`
    w1, b1, w2, b2 = params
    B, D_in = x.shape
    H = w1.shape[1]
    E = w2.shape[1]

    if b_tile is None:
        b_tile = _default_b_tile()

    x = x.astype(jnp.float32)                 # no wrapper-side bf16 pass over x
    w1_bf = w1.astype(jnp.bfloat16)           # tiny, VMEM-resident weights
    w2_bf = w2.astype(jnp.bfloat16)
    b1_f = b1.reshape(1, H).astype(jnp.float32)
    b2_f = b2.reshape(1, E).astype(jnp.float32)

    if B <= b_tile:
        # Small batch: latency-bound. Single gridless invocation; whole arrays
        # are placed in VMEM by default (no grid-step overhead, no pipeline).
        # (For B below ~1-2K a plain XLA dot would also be fine; we keep the
        # Pallas path so the kernel is always exercised.)
        return pl.pallas_call(
            _mlp_kernel,
            out_shape=jax.ShapeDtypeStruct((B, E), jnp.float32),
        )(x, w1_bf, b1_f, w2_bf, b2_f)

    fold = 8
    if B % fold == 0 and b_tile >= 8 * fold:
        # Lane-dense path: fold 8 rows per folded row (free row-major reshape)
        # and use 8x block-diagonal weights -> output tile (bf_tile, 128) is
        # byte-identical to (b_tile, 16) but uses all 128 lanes (unmasked vst),
        # and the first-dot K goes 32 -> 256 (matches the 256-wide MXU).
        bf_tile = max(8, (b_tile // fold) // 8 * 8)
        Bf = B // fold
        x_f = x.reshape(Bf, fold * D_in)
        eye = jnp.eye(fold, dtype=jnp.float32)
        w1_blk = jnp.kron(eye, w1.astype(jnp.float32)).astype(jnp.bfloat16)  # (8*D_in, 8*H)
        w2_blk = jnp.kron(eye, w2.astype(jnp.float32)).astype(jnp.bfloat16)  # (8*H, 8*E)
        b1_blk = jnp.tile(b1_f, (1, fold))                                   # (1, 8*H)
        b2_blk = jnp.tile(b2_f, (1, fold))                                   # (1, 8*E)

        n_tiles = pl.cdiv(Bf, bf_tile)   # ragged last block masked by Pallas
        out_f = pl.pallas_call(
            _mlp_kernel,
            out_shape=jax.ShapeDtypeStruct((Bf, fold * E), jnp.float32),
            grid=(n_tiles,),
            in_specs=[
                pl.BlockSpec((bf_tile, fold * D_in), lambda i: (i, 0)),  # x: tiled
                pl.BlockSpec((fold * D_in, fold * H), lambda i: (0, 0)), # w1: resident
                pl.BlockSpec((1, fold * H), lambda i: (0, 0)),           # b1: resident
                pl.BlockSpec((fold * H, fold * E), lambda i: (0, 0)),    # w2: resident
                pl.BlockSpec((1, fold * E), lambda i: (0, 0)),           # b2: resident
            ],
            out_specs=pl.BlockSpec((bf_tile, fold * E), lambda i: (i, 0)),
            compiler_params=pltpu.CompilerParams(
                dimension_semantics=("parallel",),   # shard tiles across TCs (v7x)
            ),
        )(x_f, w1_blk, b1_blk, w2_blk, b2_blk)
        return out_f.reshape(B, E)   # free row-major view back to (B, E)

    # Fallback (B not a multiple of 8): plain (B, E) layout, no pad / no slice;
    # the ragged last block's out-of-range rows are masked on store.
    n_tiles = pl.cdiv(B, b_tile)
    return pl.pallas_call(
        _mlp_kernel,
        out_shape=jax.ShapeDtypeStruct((B, E), jnp.float32),
        grid=(n_tiles,),
        in_specs=[
            pl.BlockSpec((b_tile, D_in), lambda i: (i, 0)),  # x: tiled over batch
            pl.BlockSpec((D_in, H), lambda i: (0, 0)),       # w1: resident
            pl.BlockSpec((1, H), lambda i: (0, 0)),          # b1: resident
            pl.BlockSpec((H, E), lambda i: (0, 0)),          # w2: resident
            pl.BlockSpec((1, E), lambda i: (0, 0)),          # b2: resident
        ],
        out_specs=pl.BlockSpec((b_tile, E), lambda i: (i, 0)),
        compiler_params=pltpu.CompilerParams(
            dimension_semantics=("parallel",),
        ),
    )(x, w1_bf, b1_f, w2_bf, b2_f)


def init_inner_model_params(key, d_in=32, hidden=64, emb=16):
    """Deterministic synthetic parameters for the wrapped inner model."""
    k1, k2, k3, k4 = jax.random.split(key, 4)
    w1 = jax.random.normal(k1, (d_in, hidden), dtype=jnp.float32) * 0.1
    b1 = jax.random.normal(k2, (1, hidden), dtype=jnp.float32) * 0.01
    w2 = jax.random.normal(k3, (hidden, emb), dtype=jnp.float32) * 0.1
    b2 = jax.random.normal(k4, (1, emb), dtype=jnp.float32) * 0.01
    return (w1, b1, w2, b2)


if __name__ == "__main__":
    key = jax.random.PRNGKey(0)
    kx, kp, kx2, kx3 = jax.random.split(key, 4)

    D_in, H, E = 32, 64, 16
    params = init_inner_model_params(kp, d_in=D_in, hidden=H, emb=E)
    w1, b1, w2, b2 = params

    def ref_forward(xv):
        # Reference mirroring the kernel's numerics (bf16 matmul inputs, f32 accum).
        xf = xv.astype(jnp.bfloat16).astype(jnp.float32)
        w1f = w1.astype(jnp.bfloat16).astype(jnp.float32)
        w2f = w2.astype(jnp.bfloat16).astype(jnp.float32)
        h = jnp.maximum(xf @ w1f + b1, 0.0)
        h = h.astype(jnp.bfloat16).astype(jnp.float32)
        return h @ w2f + b2

    # 1) Small batch -> gridless latency path (WrappedModel ignores `label`).
    B_small = 8
    x_small = jax.random.normal(kx, (B_small, D_in), dtype=jnp.float32)
    out_small = jax.block_until_ready(
        wrapped_model_forward(x_small, params, label=None))
    assert out_small.shape == (B_small, E)
    assert jnp.allclose(out_small, ref_forward(x_small), atol=2e-2, rtol=2e-2)

    # 2) Batch-tiled lane-dense (folded) path with a ragged last block
    #    (B=2304, b_tile=512 -> bf_tile=64, 5 grid steps; no pad, no slice).
    B_fold = 2304
    x_fold = jax.random.normal(kx2, (B_fold, D_in), dtype=jnp.float32)
    out_fold = jax.block_until_ready(
        wrapped_model_forward(x_fold, params, b_tile=512))
    assert out_fold.shape == (B_fold, E)
    assert jnp.allclose(out_fold, ref_forward(x_fold), atol=2e-2, rtol=2e-2)

    # 3) Batch-tiled fallback path (B not a multiple of 8), ragged last block.
    B_rag = 1000
    x_rag = jax.random.normal(kx3, (B_rag, D_in), dtype=jnp.float32)
    out_rag = jax.block_until_ready(
        wrapped_model_forward(x_rag, params, b_tile=512))
    assert out_rag.shape == (B_rag, E)
    assert jnp.allclose(out_rag, ref_forward(x_rag), atol=2e-2, rtol=2e-2)

    print("KERNEL_OK")
</pallas_src>

<mosaic_0001>
module attributes {stable_mosaic.version = 11 : i64} {
  func.func @_mlp_kernel(%arg0: memref<8x32xf32, #tpu.memory_space<vmem>>, %arg1: memref<32x64xbf16, #tpu.memory_space<vmem>>, %arg2: memref<1x64xf32, #tpu.memory_space<vmem>>, %arg3: memref<64x16xbf16, #tpu.memory_space<vmem>>, %arg4: memref<1x16xf32, #tpu.memory_space<vmem>>, %arg5: memref<8x16xf32, #tpu.memory_space<vmem>>) attributes {dimension_semantics = [], scalar_prefetch = 0 : i64, scratch_operands = 0 : i64, tpu.core_type = #tpu.core_type<tc>} {
    %c0 = arith.constant 0 : index
    %c0_0 = arith.constant 0 : index
    %0 = vector.load %arg0[%c0, %c0_0] : memref<8x32xf32, #tpu.memory_space<vmem>>, vector<8x32xf32>
    %1 = arith.truncf %0 : vector<8x32xf32> to vector<8x32xbf16>
    %c0_1 = arith.constant 0 : index
    %c0_2 = arith.constant 0 : index
    %2 = vector.load %arg1[%c0_1, %c0_2] : memref<32x64xbf16, #tpu.memory_space<vmem>>, vector<32x64xbf16>
    %cst = arith.constant dense<0.000000e+00> : vector<8x64xf32>
    %3 = tpu.matmul %1, %2, %cst {dimension_numbers = #tpu.dot_dimension_numbers<[1], [0], [0], [1], [0, 0, 1, 1], [], []>} : vector<8x32xbf16>, vector<32x64xbf16>, vector<8x64xf32> -> vector<8x64xf32>
    %c0_3 = arith.constant 0 : index
    %c0_4 = arith.constant 0 : index
    %4 = vector.load %arg2[%c0_3, %c0_4] : memref<1x64xf32, #tpu.memory_space<vmem>>, vector<1x64xf32>
    %5 = vector.broadcast %4 : vector<1x64xf32> to vector<8x64xf32>
    %6 = arith.addf %3, %5 : vector<8x64xf32>
    %cst_5 = arith.constant 0.000000e+00 : f32
    %7 = vector.broadcast %cst_5 : f32 to vector<8x64xf32>
    %8 = arith.maximumf %6, %7 : vector<8x64xf32>
    %9 = arith.truncf %8 : vector<8x64xf32> to vector<8x64xbf16>
    %c0_6 = arith.constant 0 : index
    %c0_7 = arith.constant 0 : index
    %10 = vector.load %arg3[%c0_6, %c0_7] : memref<64x16xbf16, #tpu.memory_space<vmem>>, vector<64x16xbf16>
    %cst_8 = arith.constant dense<0.000000e+00> : vector<8x16xf32>
    %11 = tpu.matmul %9, %10, %cst_8 {dimension_numbers = #tpu.dot_dimension_numbers<[1], [0], [0], [1], [0, 0, 1, 1], [], []>} : vector<8x64xbf16>, vector<64x16xbf16>, vector<8x16xf32> -> vector<8x16xf32>
    %c0_9 = arith.constant 0 : index
    %c0_10 = arith.constant 0 : index
    %12 = vector.load %arg4[%c0_9, %c0_10] : memref<1x16xf32, #tpu.memory_space<vmem>>, vector<1x16xf32>
    %13 = vector.broadcast %12 : vector<1x16xf32> to vector<8x16xf32>
    %14 = arith.addf %11, %13 : vector<8x16xf32>
    %c0_11 = arith.constant 0 : index
    %c0_12 = arith.constant 0 : index
    %15 = vector.load %arg5[%c0_11, %c0_12] : memref<8x16xf32, #tpu.memory_space<vmem>>, vector<8x16xf32>
    tpu.vector_store %arg5[%c0_11, %c0_12], %14 {strides = array<i32>} : memref<8x16xf32, #tpu.memory_space<vmem>>, vector<8x16xf32>,
    return
  }
}

</mosaic_0001>

<bundles_post_ra>
// kernel: tpu_custom_call.1
= control target key start
LH: loop header
LB: loop body
LE: loop exit
PB: predicated region body
PF: predicated region fallthrough
CT: control target
= control target key end

     0   :  { %v261_v1 = vmov 0.0   ;;  %vm262_vm0 = vmmov 0   ;;  %vm47_vm1 = vcmask 261120   ;;  %s324_s0 = inlined_call_operand.vmem [shape: f32[8,32], index: 0, kind: input, shape index: {}]   ;;  %s325_s1 = inlined_call_operand.vmem [shape: bf16[32,64], index: 1, kind: input, shape index: {}]   ;;  %s326_s2 = inlined_call_operand.vmem [shape: f32[1,64], index: 2, kind: input, shape index: {}]   ;;  %s327_s3 = inlined_call_operand.vmem [shape: bf16[64,16], index: 3, kind: input, shape index: {}]   ;;  %s328_s4 = inlined_call_operand.vmem [shape: f32[1,16], index: 4, kind: input, shape index: {}]   ;;  %s329_s5 = inlined_call_operand.hbm [shape: f32[8,16], index: 5, kind: output, shape index: {}]  }
   0x1   :  { %v233_v0 = vld [vmem:[%s325_s1 + $0x8] sm:$0xff]   ;;  %210 = vmatprep.subr.bf16.mxu0 %v261_v1  ;;  %v234_v2 = vld [vmem:[%s325_s1] sm:$0xff]   ;;  %218 = vmatprep.subr.bf16.mxu1 %v261_v1  ;;  %v235_v4 = vld [vmem:[%s327_s3 + $0x18] sm:$0xff]  }
   0x2   :  { %211 = vmatpush3.bf16.msra.mxu0 %v233_v0  ;;  %214 = vmatprep.mubr.msk.bf16.mxu0 %vm262_vm0, %v261_v1  ;;  %v22_v3 = vld [vmem:[%s324_s0] sm:$0xff]  ;;  %v236_v5 = vld [vmem:[%s327_s3 + $0x10] sm:$0xff]  }
   0x3   :  { %212 = vmatprep.subr.bf16.mxu0 %v261_v1  ;;  %226 = vmatprep.mubr.msk.bf16.mxu1 %vm262_vm0, %v261_v1  ;;  %v23_v6 = vpack.c.bf16 %v22_v3, %v22_v3 }
   0x4   :  { %219 = vmatpush3.bf16.msra.mxu1 %v235_v4 }
   0x5   :  { %220 = vmatprep.subr.bf16.mxu1 %v261_v1 }
   0x6   :  { %213 = vmatpush3.bf16.msra.mxu0 %v234_v2 }
   0x7   :  { %10 = vsyncpa [#allocation3], 0  ;;  %v237_v7 = vld [vmem:[%s327_s3 + $0x8] sm:$0xff]   ;;  %v238_v8 = vld [vmem:[%s327_s3] sm:$0xff]   ;;  %vm132_vm2 = vcmask 523264   ;;  %s263_s9 = smov [#allocation2]  }
   0x8   :  { %221 = vmatpush3.bf16.msra.mxu1 %v236_v5  ;;  %v192_v9 = vld [vmem:[%s326_s2] ss:$0 sm:$0xff]  ;;  %s184_s3 = sshll.u32 %s263_s9, 4  ;;  %vm176_vm3 = vcmask 130048   ;;  %s185_s3 = int_to_ptr.vmem [resolvable:$true] %s184_s3 }
   0x9   :  { %215 = vmatmul.mubr.msk.bf16.vlgmr.msra.gmra.mxu0 %vm47_vm1, %v23_v6  ;;  %222 = vmatprep.subr.bf16.mxu1 %v261_v1  ;;  %v196_v17 = vld [vmem:[%s328_s4] ss:$0 sm:$0xff]  ;;  %s239_s2 = scalar_lea.vmem %s185_s3, 128  ;;  %p244_p1 = scmp.lt.s32.totalorder %s185_s3, %s185_s3 }
   0xa   :  { %p240_p0 = scmp.ne.s32.totalorder %s185_s3, %s239_s2  ;;  %p245_p2 = scmp.lt.s32.totalorder %s239_s2, %s239_s2 }
   0xc   :  { %223 = vmatpush3.bf16.msra.mxu1 %v237_v7  ;;  %p246_p3 = por %p245_p2, %p244_p1 }
   0xd   :  { %224 = vmatprep.subr.bf16.mxu1 %v261_v1 }
   0xe   :  { %p247_p4 = pnand %p246_p3, %p240_p0 }
  0x10   :  { %225 = vmatpush3.bf16.msra.mxu1 %v238_v8 }
  0xc9   :  { %v85_v10 = vpop.f32.mrf.mxu0 }
  0xca   :  { %v86_v11 = vadd.f32 %v192_v9, %v85_v10 }
  0xcb   :  { %v216_v12 = vpop.f32.mrf.mxu0 }
  0xcc   :  { %v91_v13 = vmax.f32 %v86_v11, 0.0 }
  0xcd   :  { %v88_v14 = vpop.f32.mrf.mxu0 }
  0xce   :  { %v92_v15 = vpack.c.bf16 %v91_v13, %v91_v13 }
  0xcf   :  { %v217_v16 = vpop.f32.mrf.mxu0 }
  0xd0   :  { %227 = vmatmul.mubr.msk.bf16.vlgmr.msra.gmra.mxu1 %vm132_vm2, %v92_v15 }
 0x190   :  { %v170_v18 = vpop.f32.mrf.mxu1 }
 0x191   :  { %v171_v19 = vadd.f32 %v196_v17, %v170_v18 }
 0x192   :  { %v228_v20 = vpop.f32.mrf.mxu1 }
 0x193   :  { %177 = vst.msk [vmem:[#allocation2] sm:$0xff] %vm176_vm3, %v171_v19 }
 0x194   :  { %v173_v21 = vpop.f32.mrf.mxu1 }
 0x195   :  { %250 = shalt.err (!%p247_p4)
}
 0x196   :  { %187 = dma.vmem_to_hbm [thread:$0]  %s185_s3, 128, %s329_s5, [#allocation3]   ;;  %v229_v22 = vpop.f32.mrf.mxu1 }
 0x197   :  { %259 = dma.done.wait [#allocation3], 128  }
 0x198   :  { %260 = vsyncadd [#allocation3], 4294967168 }
 0x199   :  { %191 = vsyncpa [#allocation3], 1 }

</bundles_post_ra>
